<compile_context>
chip_gen: v5e
topology: v5e:2x2
jax: 0.10.0
libtpu: 0.0.40
codegen_flags: <defaults>
</compile_context>

<pallas_src>
import jax
import jax.numpy as jnp
from jax import lax
from jax.experimental import pallas as pl
from jax.experimental.pallas import tpu as pltpu

_LANE = 128


def _make_dice_kernel(exp, t_hw, hw_actual, needs_mask):
    def _pow(v):
        # integer exponents -> pure VPU multiplies (no log/exp round-trip)
        if isinstance(exp, int) and exp >= 1:
            out = v
            for _ in range(exp - 1):
                out = out * v
            return out
        return v ** exp

    def kernel(pred_ref, tgt_ref, out_ref, num_acc, den_acc):
        hw = pl.program_id(1)

        @pl.when(hw == 0)
        def _():
            num_acc[...] = jnp.zeros_like(num_acc)
            den_acc[...] = jnp.zeros_like(den_acc)

        x = pred_ref[0].astype(jnp.float32)      # (C, T_HW)
        t = tgt_ref[0].astype(jnp.float32)       # (C, T_HW), upcast from int8/bf16/...

        # per-pixel softmax over the channel (sublane) axis == PyTorch dim=1
        m = jnp.max(x, axis=0, keepdims=True)
        e = jnp.exp(x - m)
        p = e / jnp.sum(e, axis=0, keepdims=True)

        if needs_mask:
            # zero out padded spatial columns: target padding is already zero,
            # but the softmax of padded pred columns is not.
            col = hw * t_hw + lax.broadcasted_iota(jnp.int32, p.shape, 1)
            p = jnp.where(col < hw_actual, p, 0.0)

        num_partial = jnp.sum(p * t)
        den_partial = jnp.sum(_pow(p) + _pow(t))

        num_acc[...] += jnp.full(num_acc.shape, num_partial, jnp.float32)
        den_acc[...] += jnp.full(den_acc.shape, den_partial, jnp.float32)

        @pl.when(hw == pl.num_programs(1) - 1)
        def _():
            # fused output tile: row 0 = num, row 1 = den (only [., 0] consumed)
            row = lax.broadcasted_iota(jnp.int32, out_ref.shape, 1)
            out_ref[...] = jnp.where(
                row == 0, num_acc[...][None],
                jnp.where(row == 1, den_acc[...][None], 0.0))

    return kernel


def dice_loss(pred, target, exp=2, smooth=1.0, ignore_index=None,
              reduction="mean"):
    # TODO(synk): ignore_index is unused in the reference forward; not implemented.
    B, C, H, W = pred.shape
    HW = H * W
    pred3 = pred.reshape(B, C, HW)
    # keep target at its native (narrow) dtype; upcast happens in-kernel.
    tgt3 = target.reshape(B, C, HW)

    # lane-aligned HW tile sized to ~2 MiB of pred per tile: 2 inputs x 2
    # double-buffers stays well inside the scoped-VMEM defaults on v5e/v6e/v7x.
    itemsize = jnp.dtype(pred.dtype).itemsize
    budget_bytes = 2 * 1024 * 1024
    t_hw = max(_LANE, (budget_bytes // max(1, C * itemsize)) // _LANE * _LANE)
    if HW <= t_hw:
        t_hw = HW                  # single tile == full extent (no (8,128) rule)
        hw_pad = HW
    else:
        hw_pad = pl.cdiv(HW, t_hw) * t_hw
    needs_mask = hw_pad != HW
    if needs_mask:
        pad = hw_pad - HW
        pred3 = jnp.pad(pred3, ((0, 0), (0, 0), (0, pad)))
        tgt3 = jnp.pad(tgt3, ((0, 0), (0, 0), (0, pad)))
    n_hw = hw_pad // t_hw

    out = pl.pallas_call(
        _make_dice_kernel(exp, t_hw, HW, needs_mask),
        out_shape=jax.ShapeDtypeStruct((B, 8, _LANE), jnp.float32),
        grid=(B, n_hw),
        in_specs=[
            pl.BlockSpec((1, C, t_hw), lambda b, h: (b, 0, h)),
            pl.BlockSpec((1, C, t_hw), lambda b, h: (b, 0, h)),
        ],
        out_specs=pl.BlockSpec((1, 8, _LANE), lambda b, h: (b, 0, 0)),
        scratch_shapes=[
            pltpu.VMEM((8, _LANE), jnp.float32),   # num accumulator
            pltpu.VMEM((8, _LANE), jnp.float32),   # den accumulator
        ],
        compiler_params=pltpu.CompilerParams(
            dimension_semantics=("parallel", "arbitrary"),
        ),
    )(pred3, tgt3)

    num_b = out[:, 0, 0] + smooth
    den_b = out[:, 1, 0] + smooth
    loss_b = 1.0 - num_b / den_b

    if reduction == "mean":
        return jnp.mean(loss_b)
    if reduction == "sum":
        return jnp.sum(loss_b)
    return loss_b


def _reference(pred, target, exp=2, smooth=1.0):
    # pure-JAX reference for a quick sanity check
    p = jax.nn.softmax(pred, axis=1)
    B = pred.shape[0]
    pf = p.reshape(B, -1)
    tf = target.reshape(B, -1).astype(jnp.float32)
    num = jnp.sum(pf * tf, axis=1) + smooth
    den = jnp.sum(pf ** exp + tf ** exp, axis=1) + smooth
    return jnp.mean(1.0 - num / den)


if __name__ == "__main__":
    key = jax.random.PRNGKey(0)
    k1, k2 = jax.random.split(key)

    B, C, H, W = 2, 4, 16, 16
    pred = jax.random.normal(k1, (B, C, H, W), dtype=jnp.float32)
    labels = jax.random.randint(k2, (B, H, W), 0, C)
    # one-hot target in NCHW, shipped as int8 (narrow HBM stream; kernel upcasts)
    target = jnp.transpose(
        jax.nn.one_hot(labels, C, dtype=jnp.int8), (0, 3, 1, 2)
    )

    loss = dice_loss(pred, target, exp=2, smooth=1.0, reduction="mean")
    loss = jax.block_until_ready(loss)

    ref = _reference(pred, target, exp=2, smooth=1.0)
    assert jnp.allclose(loss, ref, rtol=1e-5, atol=1e-5), (loss, ref)

    print("KERNEL_OK")
</pallas_src>

<mosaic_0001>
module attributes {stable_mosaic.version = 11 : i64} {
  func.func @kernel(%arg0: i32, %arg1: i32, %arg2: memref<1x4x256xf32, #tpu.memory_space<vmem>>, %arg3: memref<1x4x256xi8, #tpu.memory_space<vmem>>, %arg4: memref<1x8x128xf32, #tpu.memory_space<vmem>>, %arg5: memref<8x128xf32, #tpu.memory_space<vmem>>, %arg6: memref<8x128xf32, #tpu.memory_space<vmem>>) attributes {dimension_semantics = [#tpu.dimension_semantics<parallel>, #tpu.dimension_semantics<arbitrary>], iteration_bounds = array<i64: 2, 1>, scalar_prefetch = 0 : i64, scratch_operands = 2 : i64, tpu.core_type = #tpu.core_type<tc>, window_params = [{transform_indices = @transform_0, window_bounds = array<i64: 1, 4, 256>}, {transform_indices = @transform_1, window_bounds = array<i64: 1, 4, 256>}, {transform_indices = @transform_2, window_bounds = array<i64: 1, 8, 128>}]} {
    %c0_i32 = arith.constant 0 : i32
    %0 = arith.cmpi eq, %arg1, %c0_i32 : i32
    %1 = arith.extui %0 : i1 to i32
    %c0_i32_0 = arith.constant 0 : i32
    %2 = arith.cmpi ne, %1, %c0_i32_0 : i32
    scf.if %2 {
      %cst_19 = arith.constant 0.000000e+00 : f32
      %40 = vector.broadcast %cst_19 : f32 to vector<8x128xf32>
      %c0_20 = arith.constant 0 : index
      %c0_21 = arith.constant 0 : index
      %41 = vector.load %arg5[%c0_20, %c0_21] : memref<8x128xf32, #tpu.memory_space<vmem>>, vector<8x128xf32>
      tpu.vector_store %arg5[%c0_20, %c0_21], %40 {strides = array<i32>} : memref<8x128xf32, #tpu.memory_space<vmem>>, vector<8x128xf32>,
      %cst_22 = arith.constant 0.000000e+00 : f32
      %42 = vector.broadcast %cst_22 : f32 to vector<8x128xf32>
      %c0_23 = arith.constant 0 : index
      %c0_24 = arith.constant 0 : index
      %43 = vector.load %arg6[%c0_23, %c0_24] : memref<8x128xf32, #tpu.memory_space<vmem>>, vector<8x128xf32>
      tpu.vector_store %arg6[%c0_23, %c0_24], %42 {strides = array<i32>} : memref<8x128xf32, #tpu.memory_space<vmem>>, vector<8x128xf32>,
    } else {
    }
    %c0 = arith.constant 0 : index
    %c0_1 = arith.constant 0 : index
    %c0_2 = arith.constant 0 : index
    %3 = vector.load %arg2[%c0, %c0_1, %c0_2] : memref<1x4x256xf32, #tpu.memory_space<vmem>>, vector<1x4x256xf32>
    %4 = vector.shape_cast %3 : vector<1x4x256xf32> to vector<4x256xf32>
    %c0_3 = arith.constant 0 : index
    %c0_4 = arith.constant 0 : index
    %c0_5 = arith.constant 0 : index
    %5 = vector.load %arg3[%c0_3, %c0_4, %c0_5] : memref<1x4x256xi8, #tpu.memory_space<vmem>>, vector<1x4x256xi8>
    %6 = vector.shape_cast %5 : vector<1x4x256xi8> to vector<4x256xi8>
    %7 = arith.sitofp %6 : vector<4x256xi8> to vector<4x256xf32>
    %cst = arith.constant dense<0xFF800000> : vector<256xf32>
    %8 = vector.multi_reduction <maximumf>, %4, %cst [0] : vector<4x256xf32> to vector<256xf32>
    %9 = vector.shape_cast %8 : vector<256xf32> to vector<1x256xf32>
    %10 = vector.broadcast %9 : vector<1x256xf32> to vector<4x256xf32>
    %11 = arith.subf %4, %10 : vector<4x256xf32>
    %12 = math.exp %11 : vector<4x256xf32>
    %cst_6 = arith.constant dense<0.000000e+00> : vector<256xf32>
    %13 = vector.multi_reduction <add>, %12, %cst_6 [0] : vector<4x256xf32> to vector<256xf32>
    %14 = vector.shape_cast %13 : vector<256xf32> to vector<1x256xf32>
    %15 = vector.broadcast %14 : vector<1x256xf32> to vector<4x256xf32>
    %16 = arith.divf %12, %15 : vector<4x256xf32>
    %17 = arith.mulf %16, %7 : vector<4x256xf32>
    %18 = vector.shape_cast %17 : vector<4x256xf32> to vector<1x4x256xf32>
    %cst_7 = arith.constant dense<0.000000e+00> : vector<1xf32>
    %19 = vector.multi_reduction <add>, %18, %cst_7 [1, 2] : vector<1x4x256xf32> to vector<1xf32>
    %20 = vector.shape_cast %19 : vector<1xf32> to vector<1x1x1xf32>
    %21 = vector.extract %20[0, 0, 0] : f32 from vector<1x1x1xf32>
    %22 = arith.mulf %16, %16 : vector<4x256xf32>
    %23 = arith.mulf %7, %7 : vector<4x256xf32>
    %24 = arith.addf %22, %23 : vector<4x256xf32>
    %25 = vector.shape_cast %24 : vector<4x256xf32> to vector<1x4x256xf32>
    %cst_8 = arith.constant dense<0.000000e+00> : vector<1xf32>
    %26 = vector.multi_reduction <add>, %25, %cst_8 [1, 2] : vector<1x4x256xf32> to vector<1xf32>
    %27 = vector.shape_cast %26 : vector<1xf32> to vector<1x1x1xf32>
    %28 = vector.extract %27[0, 0, 0] : f32 from vector<1x1x1xf32>
    %c0_9 = arith.constant 0 : index
    %c0_10 = arith.constant 0 : index
    %29 = vector.load %arg5[%c0_9, %c0_10] : memref<8x128xf32, #tpu.memory_space<vmem>>, vector<8x128xf32>
    %30 = vector.broadcast %21 : f32 to vector<8x128xf32>
    %31 = arith.addf %29, %30 : vector<8x128xf32>
    %c0_11 = arith.constant 0 : index
    %c0_12 = arith.constant 0 : index
    %32 = vector.load %arg5[%c0_11, %c0_12] : memref<8x128xf32, #tpu.memory_space<vmem>>, vector<8x128xf32>
    tpu.vector_store %arg5[%c0_11, %c0_12], %31 {strides = array<i32>} : memref<8x128xf32, #tpu.memory_space<vmem>>, vector<8x128xf32>,
    %c0_13 = arith.constant 0 : index
    %c0_14 = arith.constant 0 : index
    %33 = vector.load %arg6[%c0_13, %c0_14] : memref<8x128xf32, #tpu.memory_space<vmem>>, vector<8x128xf32>
    %34 = vector.broadcast %28 : f32 to vector<8x128xf32>
    %35 = arith.addf %33, %34 : vector<8x128xf32>
    %c0_15 = arith.constant 0 : index
    %c0_16 = arith.constant 0 : index
    %36 = vector.load %arg6[%c0_15, %c0_16] : memref<8x128xf32, #tpu.memory_space<vmem>>, vector<8x128xf32>
    tpu.vector_store %arg6[%c0_15, %c0_16], %35 {strides = array<i32>} : memref<8x128xf32, #tpu.memory_space<vmem>>, vector<8x128xf32>,
    %c0_i32_17 = arith.constant 0 : i32
    %37 = arith.cmpi eq, %arg1, %c0_i32_17 : i32
    %38 = arith.extui %37 : i1 to i32
    %c0_i32_18 = arith.constant 0 : i32
    %39 = arith.cmpi ne, %38, %c0_i32_18 : i32
    scf.if %39 {
      %40 = tpu.iota {dimensions = array<i32: 1>} : vector<1x8x128xi32>
      %c0_i32_19 = arith.constant 0 : i32
      %41 = vector.broadcast %c0_i32_19 : i32 to vector<1x8x128xi32>
      %42 = arith.cmpi eq, %40, %41 : vector<1x8x128xi32>
      %c0_20 = arith.constant 0 : index
      %c0_21 = arith.constant 0 : index
      %43 = vector.load %arg5[%c0_20, %c0_21] : memref<8x128xf32, #tpu.memory_space<vmem>>, vector<8x128xf32>
      %44 = vector.shape_cast %43 : vector<8x128xf32> to vector<1x8x128xf32>
      %c1_i32 = arith.constant 1 : i32
      %45 = vector.broadcast %c1_i32 : i32 to vector<1x8x128xi32>
      %46 = arith.cmpi eq, %40, %45 : vector<1x8x128xi32>
      %c0_22 = arith.constant 0 : index
      %c0_23 = arith.constant 0 : index
      %47 = vector.load %arg6[%c0_22, %c0_23] : memref<8x128xf32, #tpu.memory_space<vmem>>, vector<8x128xf32>
      %48 = vector.shape_cast %47 : vector<8x128xf32> to vector<1x8x128xf32>
      %cst_24 = arith.constant 0.000000e+00 : f32
      %49 = vector.broadcast %cst_24 : f32 to vector<1x8x128xf32>
      %50 = arith.select %46, %48, %49 : vector<1x8x128xi1>, vector<1x8x128xf32>
      %51 = arith.select %42, %44, %50 : vector<1x8x128xi1>, vector<1x8x128xf32>
      %c0_25 = arith.constant 0 : index
      %c0_26 = arith.constant 0 : index
      %c0_27 = arith.constant 0 : index
      %52 = vector.load %arg4[%c0_25, %c0_26, %c0_27] : memref<1x8x128xf32, #tpu.memory_space<vmem>>, vector<1x8x128xf32>
      tpu.vector_store %arg4[%c0_25, %c0_26, %c0_27], %51 {strides = array<i32>} : memref<1x8x128xf32, #tpu.memory_space<vmem>>, vector<1x8x128xf32>,
    } else {
    }
    return
  }
  func.func @transform_0(%arg0: i32, %arg1: i32) -> (i32, i32, i32) {
    %c0_i32 = arith.constant 0 : i32
    %c0_i32_0 = arith.constant 0 : i32
    return %arg0, %c0_i32, %arg1 : i32, i32, i32
  }
  func.func @transform_1(%arg0: i32, %arg1: i32) -> (i32, i32, i32) {
    %c0_i32 = arith.constant 0 : i32
    %c0_i32_0 = arith.constant 0 : i32
    return %arg0, %c0_i32, %arg1 : i32, i32, i32
  }
  func.func @transform_2(%arg0: i32, %arg1: i32) -> (i32, i32, i32) {
    %c0_i32 = arith.constant 0 : i32
    %c0_i32_0 = arith.constant 0 : i32
    %c0_i32_1 = arith.constant 0 : i32
    return %arg0, %c0_i32, %c0_i32_0 : i32, i32, i32
  }
}

</mosaic_0001>

<bundles_post_ra>
// kernel: tpu_custom_call.1
= control target key start
LH: loop header
LB: loop body
LE: loop exit
PB: predicated region body
PF: predicated region fallthrough
CT: control target
= control target key end

     0   :  { %7 = vsyncpa [#allocation5], 0  ;;  %s897_s0 = inlined_call_operand.hbm [shape: f32[2,4,256], index: 0, kind: input, shape index: {}]   ;;  %s898_s1 = inlined_call_operand.hbm [shape: s8[2,4,256], index: 1, kind: input, shape index: {}]   ;;  %s899_s2 = inlined_call_operand.hbm [shape: f32[2,8,128], index: 2, kind: output, shape index: {}]  }
   0x1   :  { %9 = vsyncpa [#allocation5 + $0x1], 0 }
   0x2   :  { %10 = vsyncpa [#allocation8], 0 }
   0x3   :  { %12 = vsyncpa [#allocation8 + $0x1], 0 }
   0x4   :  { %13 = vsyncpa [#allocation6], 0 }
   0x5   :  { %15 = vsyncpa [#allocation6 + $0x1], 0  ;;  %s742_s9 = smov 0   ;;  %s744_s10 = smov 0  }
   0x6   :  { %s746_s11 = smov 0   ;;  %s748_s12 = smov 0  }
   0x7   :  { %s750_s13 = smov 0   ;;  %s752_s14 = smov 0  }
   0x8 LB: > { %s484_s15 = sadd.s32 4294967295, %s725_s14   ;;  %s485_s16 = sadd.s32 4294967294, %s725_s14   ;;  %s725_s14 = sphi %s752_s14, %s21_s14   ;;  %s721_s13 = sphi %s750_s13, %s909_s13   ;;  %s717_s12 = sphi %s748_s12, %s908_s12   ;;  %s713_s11 = sphi %s746_s11, %s907_s11   ;;  %s709_s10 = sphi %s744_s10, %s906_s10   ;;  %s705_s9 = sphi %s742_s9, %s905_s9  }
   0x9   : > { %s33_s17 = sadd.s32 1, %s721_s13  ;;  %s42_s18 = sadd.s32 1, %s713_s11 }
   0xa   : > { %p35_p0 = scmp.ge.s32.totalorder %s33_s17, 2  ;;  %p49_p1 = scmp.ne.s32.totalorder %s713_s11, %s709_s10 }
   0xb   : > { %p50_p2 = scmp.eq.s32.totalorder %s725_s14, 0  ;;  %p55_p3 = scmp.ne.s32.totalorder %s709_s10, %s705_s9 }
   0xc   : > { %s911_s17 = smov (%p35_p0, %s33_s17), 0  ;;  %p56_p5 = scmp.eq.s32.totalorder %s484_s15, 0 }
   0xd   : > { %p783_p4 = por %p50_p2, %p49_p1  ;;  %s37_s20 = ssub.s32 %s721_s13, %s911_s17 }
   0xe   : > { %p107_p6 = scmp.eq.s32.totalorder %s484_s15, 1  ;;  %p40_p7 = scmp.eq.s32.totalorder %s37_s20, 0 }
   0xf   : > { %p789_p8 = por %p56_p5, %p55_p3  ;;  %p113_p10 = scmp.eq.s32.totalorder %s485_s16, 1 }
  0x10   : > { %p793_p9 = por %p107_p6, %p49_p1  ;;  %p487_p12 = scmp.ge.s32.totalorder %s725_s14, 2 }
  0x11   : > { %s798_s23 = scalar_select %p40_p7, %s713_s11, %s42_s18  }
  0x12   : > { %p800_p11 = por %p113_p10, %p55_p3  ;;  %p524_p13 = scmp.lt.s32.totalorder %s725_s14, 2 }
  0x13   : > { %s133_s25 = sand.u32 1, %s713_s11   ;;  %s502_s27 = sshll.u32 %s721_s13, 3 }
  0x14   : > { %s488_s26 = sshll.u32 %s133_s25, 3  ;;  %s144_s30 = scalar_lea.hbm %s897_s0, %s502_s27 }
  0x15   : > { %s137_s3 = scalar_lea.vmem [#allocation4], %s488_s26  ;;  %s146_s5 = sshll.u32 %s144_s30, 4  ;;  %s147_s5 = int_to_ptr.hbm [resolvable:$true] %s146_s5 }
  0x16   : > { %s148_s4 = sshll.u32 %s137_s3, 4  ;;  %p813_p0 = pnand %p524_p13, %p783_p4  ;;  %s149_s4 = int_to_ptr.vmem [resolvable:$true] %s148_s4 }
  0x17   : > { %p493_p1 = scmp.ge.s32.totalorder %s725_s14, 1  ;;  %p174_p2 = scmp.lt.s32.totalorder %s725_s14, 3 }
  0x18   : > { %s134_s7 = scalar_lea.sflag [#allocation5], %s133_s25  ;;  %s491_s8 = sshll.u32 %s133_s25, 1 }
  0x19   : > { %516 = dma.hbm_to_vmem [thread:$0]  (!%p813_p0), %s147_s5, 128, %s149_s4, %s134_s7  }
  0x1a   : > { %p175_p3 = pnand %p493_p1, %p174_p2  ;;  %s492_s15 = sshll.u32 %s721_s13, 1 }
  0x1b   : > { %s165_s20 = scalar_lea.hbm %s898_s1, %s492_s15  ;;  %s159_s26 = scalar_lea.vmem [#allocation7], %s491_s8 }
  0x1c   : > { %s169_s19 = sshll.u32 %s159_s26, 4  ;;  %s167_s27 = sshll.u32 %s165_s20, 4  ;;  %s170_s19 = int_to_ptr.vmem [resolvable:$true] %s169_s19  ;;  %s168_s27 = int_to_ptr.hbm [resolvable:$true] %s167_s27 }
  0x1d   : > { %s156_s28 = scalar_lea.sflag [#allocation8], %s133_s25  ;;  %178 = sbr.rel (%p175_p3) target bundleno = 329 (0x149), region = 28 }
  0x1e   : > { %519 = dma.hbm_to_vmem [thread:$0]  (!%p813_p0), %s168_s27, 32, %s170_s19, %s156_s28  }
  0x1f   : > { %s828_s29 = sand.u32 (!%p175_p3), 1, %s709_s10  }
  0x20   : > { %s494_s30 = sshll.u32 (!%p175_p3), %s828_s29, 3  ;;  %s181_s3 = scalar_lea.sflag (!%p175_p3), [#allocation5], %s828_s29 }
  0x21   : > { %s184_s4 = scalar_lea.vmem (!%p175_p3), [#allocation4], %s494_s30 }
  0x22   : > { %692 = dma.done.wait (%p789_p8), %s181_s3, 128  }
  0x23   : > { %694 = vsyncadd (%p789_p8), %s181_s3, 4294967168  ;;  %s495_s25 = sshll.u32 %s828_s29, 1  ;;  %s191_s5 = scalar_lea.sflag [#allocation8], %s828_s29 }
  0x24   : > { %s840_s6 = scalar_lea.vmem [#allocation7], %s495_s25 }
  0x25   : > { %696 = dma.done.wait (%p789_p8), %s191_s5, 32  }
  0x26   : > { %698 = vsyncadd (%p789_p8), %s191_s5, 4294967264  ;;  %v229_v0 = vld [vmem:[%s184_s4] sm:$0xff]  ;;  %vm239_vm0 = vcmask 1043456   ;;  %v230_v42 = vld [vmem:[%s840_s6] sm:$0x3]  ;;  %s499_s8 = sshll.u32 %s717_s12, 3 }
  0x27   : > { %234 = vst [vmem:[#allocation1] ss:$2 sm:$0xff] %v229_v0  ;;  %v231_v46 = vunpack.c.0.s8 %v230_v42  ;;  %s373_s18 = scalar_lea.hbm %s899_s2, %s499_s8  ;;  %s220_s20 = scalar_lea.vmem [#allocation9], %s494_s30 }
  0x28   : > { %s375_s26 = sshll.u32 %s220_s20, 4  ;;  %s377_s19 = sshll.u32 %s373_s18, 4  ;;  %s376_s26 = int_to_ptr.vmem [resolvable:$true] %s375_s26  ;;  %s378_s19 = int_to_ptr.hbm [resolvable:$true] %s377_s19 }
  0x29   : > { %v232_v50 = vcvt.s32.f32 %v231_v46  ;;  %s363_s27 = scalar_lea.sflag [#allocation6], %s828_s29  ;;  %s653_s12 = sshra.s32 %s378_s19, 4  ;;  %s654_s12 = int_to_ptr.hbm [resolvable:$true] %s653_s12 }
  0x2a   : > { %s655_s28 = scalar_lea.hbm %s654_s12, 8  ;;  %s659_s30 = scalar_lea.hbm %s899_s2, 16 }
  0x2b   : > { %v322_v56 = vmul.f32 %v232_v50, %v232_v50  ;;  %p656_p4 = scmp.ne.s32.totalorder %s654_s12, %s655_s28  ;;  %p660_p7 = scmp.lt.s32.totalorder %s654_s12, %s899_s2 }
  0x2c   : > { %p661_p8 = scmp.lt.s32.totalorder %s659_s30, %s655_s28 }
  0x2d   : > { %p657_p5 = pnand %p656_p4, %p793_p9 }
  0x2e   : > { %v235_v1 = vld.sshfl [vmem:[#allocation1] sm:$0xff pattern:$0x75316420]  ;;  %v236_v2 = vld.sshfl [vmem:[#allocation1 + $0x8] sm:$0xff pattern:$0x75316420]  ;;  %p662_p10 = por %p661_p8, %p660_p7 }
  0x2f   : > { %v240_v3 = vsel %vm239_vm0, %v235_v1, -inf  ;;  %v247_v4 = vsel %vm239_vm0, %v236_v2, -inf  ;;  %p658_p6 = pneg %p657_p5 }
  0x30   : > { %v241_v5 = vrot.slane %v240_v3, 4  ;;  %v248_v6 = vrot.slane %v247_v4, 4 }
  0x31   : > { %p663_p13 = pnand %p662_p10, %p658_p6 }
  0x32   : > { %v242_v7 = vmax.f32 %v240_v3, %v241_v5  ;;  %v249_v8 = vmax.f32 %v247_v4, %v248_v6 }
  0x34   : > { %v243_v9 = vrot.slane %v242_v7, 2  ;;  %v250_v10 = vrot.slane %v249_v8, 2 }
  0x36   : > { %v244_v11 = vmax.f32 %v242_v7, %v243_v9  ;;  %v251_v12 = vmax.f32 %v249_v8, %v250_v10 }
  0x38   : > { %v245_v13 = vrot.slane %v244_v11, 1  ;;  %v252_v14 = vrot.slane %v251_v12, 1 }
  0x3a   : > { %v246_v15 = vmax.f32 %v244_v11, %v245_v13  ;;  %v253_v16 = vmax.f32 %v251_v12, %v252_v14 }
  0x3c   : > { %v256_v17 = vrot.slane %v253_v16, 4 }
  0x3e   : > { %v257_v18 = vsel %vm239_vm0, %v246_v15, %v256_v17 }
  0x3f   : > { %v259_v19 = vsub.f32 %v229_v0, %v257_v18 }
  0x41   : > { %v260_v20 = vmul.f32 1.442695, %v259_v19  ;;  %v353_v19 = vlaneseq }
  0x43   : > { %575 = vpow2.f32 %v260_v20  ;;  %v354_v20 = vshrl.u32 %v353_v19, 7 }
  0x45   : > { %vm355_vm5 = vcmp.eq.s32.totalorder %v354_v20, 0 }
  0x49   : > { %v576_v21 = vpop.eup %575 }
  0x4a   : > { %263 = vst [vmem:[#allocation1] ss:$2 sm:$0xff] %v576_v21 }
  0x51   : > { %v264_v22 = vld.sshfl [vmem:[#allocation1] sm:$0xff pattern:$0x75316420]  ;;  %v265_v23 = vld.sshfl [vmem:[#allocation1 + $0x8] sm:$0xff pattern:$0x75316420] }
  0x52   : > { %v268_v24 = vsel %vm239_vm0, %v264_v22, 0.0  ;;  %v275_v25 = vsel %vm239_vm0, %v265_v23, 0.0 }
  0x53   : > { %v269_v26 = vrot.slane %v268_v24, 4  ;;  %v276_v27 = vrot.slane %v275_v25, 4 }
  0x55   : > { %v270_v28 = vadd.f32 %v269_v26, %v268_v24  ;;  %v277_v29 = vadd.f32 %v276_v27, %v275_v25 }
  0x57   : > { %v271_v30 = vrot.slane %v270_v28, 2  ;;  %v278_v31 = vrot.slane %v277_v29, 2 }
  0x59   : > { %v272_v32 = vadd.f32 %v271_v30, %v270_v28  ;;  %v279_v33 = vadd.f32 %v278_v31, %v277_v29 }
  0x5b   : > { %v273_v34 = vrot.slane %v272_v32, 1  ;;  %v280_v35 = vrot.slane %v279_v33, 1 }
  0x5d   : > { %v274_v36 = vadd.f32 %v273_v34, %v272_v32  ;;  %v281_v37 = vadd.f32 %v280_v35, %v279_v33 }
  0x5f   : > { %v284_v38 = vrot.slane %v281_v37, 4 }
  0x61   : > { %v285_v39 = vsel %vm239_vm0, %v274_v36, %v284_v38 }
  0x62   : > { %577 = vrcp.f32 %v285_v39  ;;  %v298_v43 = vand.u32 2147483648, %v285_v39  ;;  %vm292_vm1 = vweird.f32 %v285_v39  ;;  %v296_v45 = vand.u32 2147483647, %v285_v39 }
  0x64   : > { %v299_v48 = vor.u32 1.1754944e-38, %v298_v43  ;;  %vm297_vm4 = vcmp.eq.f32.partialorder %v296_v45, 8.507059e+37 }
  0x68   : > { %v578_v40 = vpop.eup %577 }
  0x69   : > { %v288_v41 = vmul.f32 %v578_v40, %v285_v39  ;;  %vm293_vm2 = vweird.f32 %v578_v40 }
  0x6a   : > { %vm294_vm3 = vmor %vm292_vm1, %vm293_vm2 }
  0x6b   : > { %v289_v44 = vsub.f32 1.0, %v288_v41 }
  0x6d   : > { %v290_v47 = vmul.f32 %v578_v40, %v289_v44 }
  0x6f   : > { %v291_v49 = vadd.f32 %v578_v40, %v290_v47 }
  0x71   : > { %v295_v51 = vsel %vm294_vm3, %v578_v40, %v291_v49 }
  0x72   : > { %v300_v52 = vsel %vm297_vm4, %v299_v48, %v295_v51 }
  0x73   : > { %v301_v53 = vmul.f32 %v576_v21, %v300_v52 }
  0x75   : > { %v302_v54 = vmul.f32 %v301_v53, %v232_v50  ;;  %v321_v55 = vmul.f32 %v301_v53, %v301_v53 }
  0x77   : > { %304 = vst [vmem:[#allocation1] ss:$2 sm:$0xff] %v302_v54  ;;  %v323_v57 = vadd.f32 %v322_v56, %v321_v55 }
  0x7e   : > { %v305_v58 = vld.sshfl [vmem:[#allocation1] sm:$0xff pattern:$0x75316420]  ;;  %v306_v59 = vld.sshfl [vmem:[#allocation1 + $0x8] sm:$0xff pattern:$0x75316420] }
  0x7f   : > { %v309_v60 = vsel %vm239_vm0, %v305_v58, 0.0  ;;  %v310_v61 = vsel %vm239_vm0, %v306_v59, 0.0  ;;  %325 = vst [vmem:[#allocation1] ss:$2 sm:$0xff] %v323_v57 }
  0x80   : > { %v311_v62 = vadd.f32 %v310_v61, %v309_v60 }
  0x82   : > { %312 = vadd.xlane.f32.xlu0 %v311_v62 }
  0x86   : > { %v326_v63 = vld.sshfl [vmem:[#allocation1] sm:$0xff pattern:$0x75316420]  ;;  %v327_v0 = vld.sshfl [vmem:[#allocation1 + $0x8] sm:$0xff pattern:$0x75316420] }
  0x87   : > { %v330_v1 = vsel %vm239_vm0, %v326_v63, 0.0  ;;  %v331_v2 = vsel %vm239_vm0, %v327_v0, 0.0 }
  0x88   : > { %v332_v3 = vadd.f32 %v331_v2, %v330_v1 }
  0x8a   : > { %333 = vadd.xlane.f32.xlu0 %v332_v3 }
  0xf5   : > { %v313_v4 = vpop.xlane.xlu0 %312 }
  0xf6   : > { %v314_v5 = vrot.slane %v313_v4, 4 }
  0xf8   : > { %v315_v6 = vadd.f32 %v314_v5, %v313_v4 }
  0xfa   : > { %v316_v7 = vrot.slane %v315_v6, 2 }
  0xfc   : > { %v317_v8 = vadd.f32 %v316_v7, %v315_v6 }
  0xfd   : > { %v334_v9 = vpop.xlane.xlu0 %333 }
  0xfe   : > { %v335_v10 = vrot.slane %v334_v9, 4  ;;  %v318_v11 = vrot.slane %v317_v8, 1 }
 0x100   : > { %v336_v12 = vadd.f32 %v335_v10, %v334_v9  ;;  %v319_v13 = vadd.f32 %v318_v11, %v317_v8 }
 0x102   : > { %v337_v14 = vrot.slane %v336_v12, 2  ;;  %503 = vpush %v319_v13 }
 0x104   : > { %v338_v15 = vadd.f32 %v337_v14, %v336_v12 }
 0x106   : > { %v339_v16 = vrot.slane %v338_v15, 1 }
 0x108   : > { %v340_v17 = vadd.f32 %v339_v16, %v338_v15 }
 0x10a   : > { %505 = vpush %v340_v17 }
 0x133   : > { %s504_s21 = spop %503 }
 0x134   : > { %v343_v21 = vstv %s504_s21 }
 0x13b   : > { %s506_s7 = spop %505 }
 0x13c   : > { %v347_v18 = vstv %s506_s7 }
 0x13d   : > { %349 = vst [vmem:[#allocation3] sm:$0xff] %v347_v18 }
 0x144   : > { %v497_v22 = vld [vmem:[#allocation3] sm:$0x2] }
 0x145   : > { %v360_v23 = vsel %vm355_vm5, %v343_v21, %v497_v22 }
 0x146   : > { %361 = vst [vmem:[%s220_s20] sm:$0xff] %v360_v23 }
 0x147   : > { %666 = shalt.err (!%p663_p13)
}
 0x148   : > { %511 = dma.vmem_to_hbm [thread:$0]  (%p793_p9), %s376_s26, 128, %s378_s19, %s363_s27  }
 0x149 PF: > { %s389_s29 = sand.u32 1, %s705_s9   ;;  %p521_p0 = pnand %p487_p12, %p800_p11 }
 0x14a   : > { %s390_s6 = scalar_lea.sflag [#allocation6], %s389_s29 }
 0x14b   : > { %p522_p1 = pneg %p521_p0 }
 0x14d   : > { %700 = dma.done.wait (%p522_p1), %s390_s6, 128  }
 0x14e   : > { %702 = vsyncadd (%p522_p1), %s390_s6, 4294967168  ;;  %s21_s14 = sadd.s32 1, %s725_s14   ;;  %s905_s9 = smov %s709_s10 }
 0x14f   : > { %p18_p2 = scmp.ge.s32.totalorder %s21_s14, 4   ;;  %s906_s10 = smov %s713_s11 }
 0x150   : > { %s907_s11 = smov %s798_s23  ;;  %s908_s12 = smov %s721_s13 }
 0x151   : > { %s909_s13 = smov %s911_s17  ;;  %20 = sbr.rel (!%p18_p2) target bundleno = 8 (0x8), region = 94 }
 0x156   :  { %396 = vsyncpa [#allocation5], 1 }
 0x157   :  { %398 = vsyncpa [#allocation5 + $0x1], 1 }
 0x158   :  { %399 = vsyncpa [#allocation8], 1 }
 0x159   :  { %401 = vsyncpa [#allocation8 + $0x1], 1 }
 0x15a   :  { %402 = vsyncpa [#allocation6], 1 }
 0x15b   :  { %404 = vsyncpa [#allocation6 + $0x1], 1 }

</bundles_post_ra>
